<compile_context>
chip_gen: v5e
topology: v5e:2x2
jax: 0.10.0
libtpu: 0.0.40
codegen_flags: <defaults>
</compile_context>

<pallas_src>
import functools
import math

import numpy as np
import jax
import jax.numpy as jnp
from jax import lax
from jax.experimental import pallas as pl
from jax.experimental.pallas import tpu as pltpu

EPS = 1e-5
NEG_SLOPE = 0.01                # F.leaky_relu default
MAX_ROW_TILE = 2048             # rows per grid step (multiple of 16)


def _round_up(v, m):
    return (v + m - 1) // m * m


def _vmem_limit_bytes():
    """Per-generation scoped-VMEM limit: ~75% of physical, capped at 100 MiB
    (v5e/v6e: 128 MiB -> 96 MiB; v7x: 64 MiB -> 48 MiB)."""
    try:
        cap = int(pltpu.get_tpu_info().vmem_capacity_bytes)
    except Exception:
        cap = 64 * 1024 * 1024
    return max(32 * 1024 * 1024, min(cap * 3 // 4, 100 * 1024 * 1024))


def _pick_tile(m, row_bytes, vmem_limit):
    """Row tile: multiple of 16 (bf16 sublane packing), VMEM-budgeted, and
    split into >= 2 grid steps when possible so the 'parallel' dim can feed
    both TensorCores on v7x."""
    m16 = _round_up(m, 16)
    budget = vmem_limit // 4                          # double-buffered blocks + headroom
    cap = max(16, (budget // max(row_bytes, 1)) // 16 * 16)
    tm = min(MAX_ROW_TILE, cap, m16)
    if tm >= m16 and m16 >= 32:
        tm = _round_up(m16 // 2, 16)                  # keep 2 parallel grid steps
    mp = _round_up(m16, tm)
    return tm, mp


def _cparams(vmem_limit):
    return pltpu.CompilerParams(
        dimension_semantics=("parallel",),
        vmem_limit_bytes=vmem_limit,
    )


# ----------------------------- Pallas kernels ------------------------------ #
def _conv_stats_kernel(p_ref, w_ref, y_ref, sum_ref, sq_ref):
    """conv-as-matmul (bf16 operands, f32 MXU accumulate), bf16 tile store,
    plus per-channel partial sum / sum-of-squares.

    Stats are computed by streaming the just-stored tile back from y_ref and
    reducing with vector sums (the MXU never sees them)."""
    y = jnp.dot(p_ref[...], w_ref[...], preferred_element_type=jnp.float32)
    y_ref[...] = y.astype(y_ref.dtype)
    yv = y_ref[...].astype(jnp.float32)       # stats match the stored precision
    sum_ref[...] = jnp.sum(yv, axis=0, keepdims=True)[None]
    sq_ref[...] = jnp.sum(yv * yv, axis=0, keepdims=True)[None]


def _bn_act_conv_stats_kernel(p_ref, scale_ref, shift_ref, w_ref,
                              y_ref, sum_ref, sq_ref):
    """Fused: folded BN1 scale/shift + LeakyReLU on the im2col patch columns
    (VPU work hidden under the MXU), conv-as-matmul, then per-channel partial
    stats for BN2."""
    a = p_ref[...].astype(jnp.float32) * scale_ref[...] + shift_ref[...]
    a = jnp.where(a >= 0, a, NEG_SLOPE * a)
    y = jnp.dot(a.astype(jnp.bfloat16), w_ref[...],
                preferred_element_type=jnp.float32)
    y_ref[...] = y
    yv = y_ref[...]
    sum_ref[...] = jnp.sum(yv, axis=0, keepdims=True)[None]
    sq_ref[...] = jnp.sum(yv * yv, axis=0, keepdims=True)[None]


def _bn_add_act_kernel(y_ref, r_ref, s_ref, t_ref, sr_ref, tr_ref, o_ref):
    """Folded BN2 + folded shortcut BN (or identity) + residual add + LeakyReLU."""
    a = y_ref[...] * s_ref[...] + t_ref[...]
    b = r_ref[...].astype(jnp.float32) * sr_ref[...] + tr_ref[...]
    o = a + b
    o_ref[...] = jnp.where(o >= 0, o, NEG_SLOPE * o)


# ----------------------------- pallas wrappers ------------------------------ #
def _conv_stats(patches, w, tm, vmem_limit):
    mp, k = patches.shape
    c = w.shape[1]
    n = mp // tm
    cost = pl.CostEstimate(
        flops=2 * mp * k * c + 4 * mp * c,
        transcendentals=0,
        bytes_accessed=mp * k * 2 + k * c * 2 + mp * c * 2 + 2 * n * c * 4,
    )
    return pl.pallas_call(
        _conv_stats_kernel,
        out_shape=(
            jax.ShapeDtypeStruct((mp, c), jnp.bfloat16),
            jax.ShapeDtypeStruct((n, 1, c), jnp.float32),
            jax.ShapeDtypeStruct((n, 1, c), jnp.float32),
        ),
        grid=(n,),
        in_specs=[
            pl.BlockSpec((tm, k), lambda i: (i, 0)),
            pl.BlockSpec((k, c), lambda i: (0, 0)),
        ],
        out_specs=(
            pl.BlockSpec((tm, c), lambda i: (i, 0)),
            pl.BlockSpec((1, 1, c), lambda i: (i, 0, 0)),
            pl.BlockSpec((1, 1, c), lambda i: (i, 0, 0)),
        ),
        compiler_params=_cparams(vmem_limit),
        cost_estimate=cost,
    )(patches, w)


def _bn_act_conv_stats(patches, scale_cols, shift_cols, w, tm, vmem_limit):
    mp, k = patches.shape
    c = w.shape[1]
    n = mp // tm
    cost = pl.CostEstimate(
        flops=2 * mp * k * c + 4 * mp * k + 4 * mp * c,
        transcendentals=0,
        bytes_accessed=mp * k * 2 + 2 * k * 4 + k * c * 2 + mp * c * 4
        + 2 * n * c * 4,
    )
    return pl.pallas_call(
        _bn_act_conv_stats_kernel,
        out_shape=(
            jax.ShapeDtypeStruct((mp, c), jnp.float32),
            jax.ShapeDtypeStruct((n, 1, c), jnp.float32),
            jax.ShapeDtypeStruct((n, 1, c), jnp.float32),
        ),
        grid=(n,),
        in_specs=[
            pl.BlockSpec((tm, k), lambda i: (i, 0)),
            pl.BlockSpec((1, k), lambda i: (0, 0)),
            pl.BlockSpec((1, k), lambda i: (0, 0)),
            pl.BlockSpec((k, c), lambda i: (0, 0)),
        ],
        out_specs=(
            pl.BlockSpec((tm, c), lambda i: (i, 0)),
            pl.BlockSpec((1, 1, c), lambda i: (i, 0, 0)),
            pl.BlockSpec((1, 1, c), lambda i: (i, 0, 0)),
        ),
        compiler_params=_cparams(vmem_limit),
        cost_estimate=cost,
    )(patches, scale_cols, shift_cols, w)


def _bn_add_act(y, res, scale, shift, scale_r, shift_r, tm, vmem_limit):
    mp, c = y.shape
    n = mp // tm
    cost = pl.CostEstimate(flops=7 * mp * c, transcendentals=0,
                           bytes_accessed=mp * c * (4 + 2 + 4) + 4 * c * 4)
    return pl.pallas_call(
        _bn_add_act_kernel,
        out_shape=jax.ShapeDtypeStruct((mp, c), jnp.float32),
        grid=(n,),
        in_specs=[
            pl.BlockSpec((tm, c), lambda i: (i, 0)),
            pl.BlockSpec((tm, c), lambda i: (i, 0)),
            pl.BlockSpec((1, c), lambda i: (0, 0)),
            pl.BlockSpec((1, c), lambda i: (0, 0)),
            pl.BlockSpec((1, c), lambda i: (0, 0)),
            pl.BlockSpec((1, c), lambda i: (0, 0)),
        ],
        out_specs=pl.BlockSpec((tm, c), lambda i: (i, 0)),
        compiler_params=_cparams(vmem_limit),
        cost_estimate=cost,
    )(y, res, scale, shift, scale_r, shift_r)


# ------------------------------- JAX glue ---------------------------------- #
def _im2col_rows(x_nhwc, ksize, stride, pad, mp):
    """im2col: NHWC -> [mp, ksize*ksize*C], column order (kh, kw, c).
    Spatial zero pad + row pad to mp fuse into the single patch buffer the
    pallas_call consumes (no separate padded/cast copy)."""
    N, H, W, C = x_nhwc.shape
    xp = jnp.pad(x_nhwc, ((0, 0), (pad, pad), (pad, pad), (0, 0)))
    Ho = (H + 2 * pad - ksize) // stride + 1
    Wo = (W + 2 * pad - ksize) // stride + 1
    cols = []
    for di in range(ksize):
        for dj in range(ksize):
            cols.append(xp[:, di:di + stride * Ho:stride,
                           dj:dj + stride * Wo:stride, :])
    m = N * Ho * Wo
    patches = jnp.concatenate(cols, axis=-1).reshape(m, ksize * ksize * C)
    return jnp.pad(patches, ((0, mp - m), (0, 0))), (Ho, Wo)


def _fold_bn(psum, psq, count, gamma, beta):
    """Reduce per-tile partial stats; fold BN into per-channel scale/shift."""
    s = jnp.sum(psum, axis=(0, 1))
    q = jnp.sum(psq, axis=(0, 1))
    mean = s / count
    # One-pass E[y^2] - E[y]^2, guarded against tiny negative cancellation.
    # TODO(synk): switch to a two-pass / chunked-Welford variance if
    #             |mean| >> std regimes ever show drift vs the reference.
    var = jnp.maximum(q / count - mean * mean, 0.0)
    scale = gamma * lax.rsqrt(var + EPS)
    shift = beta - mean * scale
    return scale, shift


def basic_block_forward(x_nchw, params, stride):
    """Training-mode BasicBlock forward. NCHW in/out (PyTorch layout).

    Conv biases are dropped on the Pallas path: with batch-statistics
    BatchNorm right after every conv, the mean subtraction cancels them."""
    x = jnp.transpose(x_nchw, (0, 2, 3, 1)).astype(jnp.float32)   # -> NHWC
    N, H, W, Cin = x.shape
    Cout = params["w1"].shape[-1]
    K1, K2 = 9 * Cin, 9 * Cout

    Ho = (H + 2 - 3) // stride + 1
    Wo = (W + 2 - 3) // stride + 1
    M = N * Ho * Wo

    vmem_limit = _vmem_limit_bytes()
    n1 = 2 * Cout if stride != 1 else Cout        # conv1 [+ fused shortcut] cols
    row_bytes = 2 * max(K1, K2) + 4 * Cout + 2 * n1
    tm, Mp = _pick_tile(M, row_bytes, vmem_limit)

    # ---- conv1 (3x3/stride) [+ 1x1/stride shortcut fused into the same matmul]
    w1m = params["w1"].reshape(K1, Cout)
    if stride != 1:
        # 1x1/stride conv == center tap of the 3x3/stride im2col patches, so
        # embed wx there and concatenate along output channels.
        wxm = jnp.zeros((K1, Cout), params["wx"].dtype)
        wxm = wxm.at[4 * Cin:5 * Cin, :].set(params["wx"].reshape(Cin, Cout))
        wmat = jnp.concatenate([w1m, wxm], axis=1)
    else:
        wmat = w1m
    wmat = wmat.astype(jnp.bfloat16)

    p1, _ = _im2col_rows(x.astype(jnp.bfloat16), 3, stride, 1, Mp)
    y1, ps1, pq1 = _conv_stats(p1, wmat, tm, vmem_limit)          # (Mp, n1) bf16

    s1, t1 = _fold_bn(ps1[..., :Cout], pq1[..., :Cout], M,
                      params["gamma1"], params["beta1"])

    # ---- conv2 (3x3/1) with BN1 + LeakyReLU folded onto its patch columns.
    # Zero padding (spatial border + row pad to Mp) must represent zeros of the
    # activation a1 = leaky(bn1(y1)), i.e. a patch value v with v*s1 + t1 == 0.
    # Shift y1 by v before the gather and add v back, so every padded entry
    # lands exactly on v (im2col alone does NOT commute with the BN affine
    # when zero padding is involved).
    pad_val = jnp.where(s1 != 0, -t1 / jnp.where(s1 != 0, s1, 1.0), 0.0)
    y1_map = (y1[:M, :Cout].astype(jnp.float32) - pad_val).reshape(N, Ho, Wo, Cout)
    p2, _ = _im2col_rows(y1_map, 3, 1, 1, Mp)
    p2 = (p2 + jnp.tile(pad_val, 9)).astype(jnp.bfloat16)

    scale_cols = jnp.tile(s1, 9).reshape(1, K2).astype(jnp.float32)
    shift_cols = jnp.tile(t1, 9).reshape(1, K2).astype(jnp.float32)
    w2m = params["w2"].reshape(K2, Cout).astype(jnp.bfloat16)
    y2, ps2, pq2 = _bn_act_conv_stats(p2, scale_cols, shift_cols, w2m,
                                      tm, vmem_limit)             # (Mp, Cout) f32
    s2, t2 = _fold_bn(ps2, pq2, M, params["gamma2"], params["beta2"])

    # ---- shortcut
    if stride != 1:
        res = y1[:, Cout:]                                        # bf16 (Mp, Cout)
        sx, tx = _fold_bn(ps1[..., Cout:], pq1[..., Cout:], M,
                          params["gamma_x"], params["beta_x"])
    else:
        assert Cin == Cout, "identity shortcut requires Cin == Cout"
        res = jnp.pad(x.reshape(N * H * W, Cin).astype(jnp.bfloat16),
                      ((0, Mp - M), (0, 0)))
        sx = jnp.ones((Cout,), jnp.float32)
        tx = jnp.zeros((Cout,), jnp.float32)

    out = _bn_add_act(y2, res, s2.reshape(1, Cout), t2.reshape(1, Cout),
                      sx.reshape(1, Cout), tx.reshape(1, Cout), tm, vmem_limit)
    out = out[:M].reshape(N, Ho, Wo, Cout)
    return jnp.transpose(out, (0, 3, 1, 2))                       # -> NCHW


# --------------------------- pure-JAX reference ----------------------------- #
def reference_forward(x_nchw, params, stride):
    x = jnp.transpose(x_nchw, (0, 2, 3, 1)).astype(jnp.float32)

    def conv(inp, w, b, s, pad):
        y = lax.conv_general_dilated(
            inp, w, (s, s), [(pad, pad), (pad, pad)],
            dimension_numbers=("NHWC", "HWIO", "NHWC"))
        return y + b

    def bn(y, g, bt):
        mean = y.mean(axis=(0, 1, 2), keepdims=True)
        var = jnp.square(y - mean).mean(axis=(0, 1, 2), keepdims=True)
        return (y - mean) * lax.rsqrt(var + EPS) * g + bt

    def leaky(v):
        return jnp.where(v >= 0, v, NEG_SLOPE * v)

    out = conv(x, params["w1"], params["b1"], stride, 1)
    out = leaky(bn(out, params["gamma1"], params["beta1"]))
    out = conv(out, params["w2"], params["b2"], 1, 1)
    out = bn(out, params["gamma2"], params["beta2"])
    if stride != 1:
        xs = conv(x, params["wx"], params["bx"], stride, 0)
        xs = bn(xs, params["gamma_x"], params["beta_x"])
    else:
        xs = x
    out = leaky(out + xs)
    return jnp.transpose(out, (0, 3, 1, 2))


# ---------------------------------- main ------------------------------------ #
def _init_conv(key, kh, kw, cin, cout):
    kw_, kb_ = jax.random.split(key)
    fan_in = kh * kw * cin
    bound = 1.0 / math.sqrt(fan_in)
    w = jax.random.uniform(kw_, (kh, kw, cin, cout), jnp.float32, -bound, bound)
    b = jax.random.uniform(kb_, (cout,), jnp.float32, -bound, bound)
    return w, b


def _init_bn(key, c):
    kg, kb = jax.random.split(key)
    gamma = jax.random.uniform(kg, (c,), jnp.float32, 0.5, 1.5)
    beta = jax.random.uniform(kb, (c,), jnp.float32, -0.1, 0.1)
    return gamma, beta


def _make_params(key, cin, cout):
    k1, k2, k3, k4, k5, k6 = jax.random.split(key, 6)
    w1, b1 = _init_conv(k1, 3, 3, cin, cout)
    w2, b2 = _init_conv(k2, 3, 3, cout, cout)
    wx, bx = _init_conv(k3, 1, 1, cin, cout)
    g1, be1 = _init_bn(k4, cout)
    g2, be2 = _init_bn(k5, cout)
    gx, bex = _init_bn(k6, cout)
    # NOTE: conv biases are kept for the reference; the Pallas path drops them
    # since training-mode BatchNorm's mean subtraction cancels them exactly.
    return dict(w1=w1, b1=b1, w2=w2, b2=b2, wx=wx, bx=bx,
                gamma1=g1, beta1=be1, gamma2=g2, beta2=be2,
                gamma_x=gx, beta_x=bex)


def _run_case(key, n, cin, h, w, cout, stride):
    kx, kp = jax.random.split(key)
    x = jax.random.normal(kx, (n, cin, h, w), jnp.float32)
    params = _make_params(kp, cin, cout)
    fwd = jax.jit(functools.partial(basic_block_forward, stride=stride))
    out = jax.block_until_ready(fwd(x, params))
    ref = jax.block_until_ready(reference_forward(x, params, stride))
    np.testing.assert_allclose(np.asarray(out), np.asarray(ref),
                               atol=5e-2, rtol=5e-2)
    assert out.shape == ref.shape
    return out


if __name__ == "__main__":
    key = jax.random.PRNGKey(0)
    k_a, k_b = jax.random.split(key)
    # Strided block (1x1-conv shortcut fused into conv1's matmul).
    _run_case(k_a, n=2, cin=4, h=16, w=16, cout=8, stride=2)
    # Identity-shortcut block (stride 1, Cin == Cout).
    _run_case(k_b, n=2, cin=8, h=16, w=16, cout=8, stride=1)
    print("KERNEL_OK")
</pallas_src>

<mosaic_0001>
module attributes {stable_mosaic.version = 11 : i64} {
  func.func @_conv_stats_kernel(%arg0: i32, %arg1: memref<64x36xbf16, #tpu.memory_space<vmem>>, %arg2: memref<36x16xbf16, #tpu.memory_space<vmem>>, %arg3: memref<64x16xbf16, #tpu.memory_space<vmem>>, %arg4: memref<1x1x16xf32, #tpu.memory_space<vmem>>, %arg5: memref<1x1x16xf32, #tpu.memory_space<vmem>>) attributes {dimension_semantics = [#tpu.dimension_semantics<parallel>], iteration_bounds = array<i64: 2>, scalar_prefetch = 0 : i64, scratch_operands = 0 : i64, tpu.core_type = #tpu.core_type<tc>, window_params = [{transform_indices = @transform_0, window_bounds = array<i64: 64, 36>}, {pipeline_mode = #tpu.pipeline_mode<synchronous>, transform_indices = @transform_1, window_bounds = array<i64: 36, 16>}, {transform_indices = @transform_2, window_bounds = array<i64: 64, 16>}, {transform_indices = @transform_3, window_bounds = array<i64: 1, 1, 16>}, {transform_indices = @transform_4, window_bounds = array<i64: 1, 1, 16>}]} {
    %c0 = arith.constant 0 : index
    %c0_0 = arith.constant 0 : index
    %0 = vector.load %arg1[%c0, %c0_0] : memref<64x36xbf16, #tpu.memory_space<vmem>>, vector<64x36xbf16>
    %c0_1 = arith.constant 0 : index
    %c0_2 = arith.constant 0 : index
    %1 = vector.load %arg2[%c0_1, %c0_2] : memref<36x16xbf16, #tpu.memory_space<vmem>>, vector<36x16xbf16>
    %cst = arith.constant dense<0.000000e+00> : vector<64x16xf32>
    %2 = tpu.matmul %0, %1, %cst {dimension_numbers = #tpu.dot_dimension_numbers<[1], [0], [0], [1], [0, 0, 1, 1], [], []>} : vector<64x36xbf16>, vector<36x16xbf16>, vector<64x16xf32> -> vector<64x16xf32>
    %3 = arith.truncf %2 : vector<64x16xf32> to vector<64x16xbf16>
    %c0_3 = arith.constant 0 : index
    %c0_4 = arith.constant 0 : index
    %4 = vector.load %arg3[%c0_3, %c0_4] : memref<64x16xbf16, #tpu.memory_space<vmem>>, vector<64x16xbf16>
    tpu.vector_store %arg3[%c0_3, %c0_4], %3 {strides = array<i32>} : memref<64x16xbf16, #tpu.memory_space<vmem>>, vector<64x16xbf16>,
    %c0_5 = arith.constant 0 : index
    %c0_6 = arith.constant 0 : index
    %5 = vector.load %arg3[%c0_5, %c0_6] : memref<64x16xbf16, #tpu.memory_space<vmem>>, vector<64x16xbf16>
    %6 = arith.extf %5 : vector<64x16xbf16> to vector<64x16xf32>
    %cst_7 = arith.constant dense<0.000000e+00> : vector<16xf32>
    %7 = vector.multi_reduction <add>, %6, %cst_7 [0] : vector<64x16xf32> to vector<16xf32>
    %8 = vector.shape_cast %7 : vector<16xf32> to vector<1x16xf32>
    %9 = vector.shape_cast %8 : vector<1x16xf32> to vector<1x1x16xf32>
    %c0_8 = arith.constant 0 : index
    %c0_9 = arith.constant 0 : index
    %c0_10 = arith.constant 0 : index
    %10 = vector.load %arg4[%c0_8, %c0_9, %c0_10] : memref<1x1x16xf32, #tpu.memory_space<vmem>>, vector<1x1x16xf32>
    tpu.vector_store %arg4[%c0_8, %c0_9, %c0_10], %9 {strides = array<i32>} : memref<1x1x16xf32, #tpu.memory_space<vmem>>, vector<1x1x16xf32>,
    %11 = arith.mulf %6, %6 : vector<64x16xf32>
    %cst_11 = arith.constant dense<0.000000e+00> : vector<16xf32>
    %12 = vector.multi_reduction <add>, %11, %cst_11 [0] : vector<64x16xf32> to vector<16xf32>
    %13 = vector.shape_cast %12 : vector<16xf32> to vector<1x16xf32>
    %14 = vector.shape_cast %13 : vector<1x16xf32> to vector<1x1x16xf32>
    %c0_12 = arith.constant 0 : index
    %c0_13 = arith.constant 0 : index
    %c0_14 = arith.constant 0 : index
    %15 = vector.load %arg5[%c0_12, %c0_13, %c0_14] : memref<1x1x16xf32, #tpu.memory_space<vmem>>, vector<1x1x16xf32>
    tpu.vector_store %arg5[%c0_12, %c0_13, %c0_14], %14 {strides = array<i32>} : memref<1x1x16xf32, #tpu.memory_space<vmem>>, vector<1x1x16xf32>,
    return
  }
  func.func @transform_0(%arg0: i32) -> (i32, i32) {
    %c0_i32 = arith.constant 0 : i32
    %c0_i32_0 = arith.constant 0 : i32
    return %arg0, %c0_i32 : i32, i32
  }
  func.func @transform_1(%arg0: i32) -> (i32, i32) {
    %c0_i32 = arith.constant 0 : i32
    %c0_i32_0 = arith.constant 0 : i32
    %c0_i32_1 = arith.constant 0 : i32
    return %c0_i32, %c0_i32_0 : i32, i32
  }
  func.func @transform_2(%arg0: i32) -> (i32, i32) {
    %c0_i32 = arith.constant 0 : i32
    %c0_i32_0 = arith.constant 0 : i32
    return %arg0, %c0_i32 : i32, i32
  }
  func.func @transform_3(%arg0: i32) -> (i32, i32, i32) {
    %c0_i32 = arith.constant 0 : i32
    %c0_i32_0 = arith.constant 0 : i32
    %c0_i32_1 = arith.constant 0 : i32
    return %arg0, %c0_i32, %c0_i32_0 : i32, i32, i32
  }
  func.func @transform_4(%arg0: i32) -> (i32, i32, i32) {
    %c0_i32 = arith.constant 0 : i32
    %c0_i32_0 = arith.constant 0 : i32
    %c0_i32_1 = arith.constant 0 : i32
    return %arg0, %c0_i32, %c0_i32_0 : i32, i32, i32
  }
}

module attributes {stable_mosaic.version = 11 : i64} {
  func.func @_bn_act_conv_stats_kernel(%arg0: i32, %arg1: memref<64x72xbf16, #tpu.memory_space<vmem>>, %arg2: memref<1x72xf32, #tpu.memory_space<vmem>>, %arg3: memref<1x72xf32, #tpu.memory_space<vmem>>, %arg4: memref<72x8xbf16, #tpu.memory_space<vmem>>, %arg5: memref<64x8xf32, #tpu.memory_space<vmem>>, %arg6: memref<1x1x8xf32, #tpu.memory_space<vmem>>, %arg7: memref<1x1x8xf32, #tpu.memory_space<vmem>>) attributes {dimension_semantics = [#tpu.dimension_semantics<parallel>], iteration_bounds = array<i64: 2>, scalar_prefetch = 0 : i64, scratch_operands = 0 : i64, tpu.core_type = #tpu.core_type<tc>, window_params = [{transform_indices = @transform_0, window_bounds = array<i64: 64, 72>}, {pipeline_mode = #tpu.pipeline_mode<synchronous>, transform_indices = @transform_1, window_bounds = array<i64: 1, 72>}, {pipeline_mode = #tpu.pipeline_mode<synchronous>, transform_indices = @transform_2, window_bounds = array<i64: 1, 72>}, {pipeline_mode = #tpu.pipeline_mode<synchronous>, transform_indices = @transform_3, window_bounds = array<i64: 72, 8>}, {transform_indices = @transform_4, window_bounds = array<i64: 64, 8>}, {transform_indices = @transform_5, window_bounds = array<i64: 1, 1, 8>}, {transform_indices = @transform_6, window_bounds = array<i64: 1, 1, 8>}]} {
    %c0 = arith.constant 0 : index
    %c0_0 = arith.constant 0 : index
    %0 = vector.load %arg1[%c0, %c0_0] : memref<64x72xbf16, #tpu.memory_space<vmem>>, vector<64x72xbf16>
    %1 = arith.extf %0 : vector<64x72xbf16> to vector<64x72xf32>
    %c0_1 = arith.constant 0 : index
    %c0_2 = arith.constant 0 : index
    %2 = vector.load %arg2[%c0_1, %c0_2] : memref<1x72xf32, #tpu.memory_space<vmem>>, vector<1x72xf32>
    %3 = vector.broadcast %2 : vector<1x72xf32> to vector<64x72xf32>
    %4 = arith.mulf %1, %3 : vector<64x72xf32>
    %c0_3 = arith.constant 0 : index
    %c0_4 = arith.constant 0 : index
    %5 = vector.load %arg3[%c0_3, %c0_4] : memref<1x72xf32, #tpu.memory_space<vmem>>, vector<1x72xf32>
    %6 = vector.broadcast %5 : vector<1x72xf32> to vector<64x72xf32>
    %7 = arith.addf %4, %6 : vector<64x72xf32>
    %cst = arith.constant 0.000000e+00 : f32
    %8 = vector.broadcast %cst : f32 to vector<64x72xf32>
    %9 = arith.cmpf oge, %7, %8 : vector<64x72xf32>
    %cst_5 = arith.constant 0.00999999977 : f32
    %10 = vector.broadcast %cst_5 : f32 to vector<64x72xf32>
    %11 = arith.mulf %10, %7 : vector<64x72xf32>
    %12 = arith.select %9, %7, %11 : vector<64x72xi1>, vector<64x72xf32>
    %13 = arith.truncf %12 : vector<64x72xf32> to vector<64x72xbf16>
    %c0_6 = arith.constant 0 : index
    %c0_7 = arith.constant 0 : index
    %14 = vector.load %arg4[%c0_6, %c0_7] : memref<72x8xbf16, #tpu.memory_space<vmem>>, vector<72x8xbf16>
    %cst_8 = arith.constant dense<0.000000e+00> : vector<64x8xf32>
    %15 = tpu.matmul %13, %14, %cst_8 {dimension_numbers = #tpu.dot_dimension_numbers<[1], [0], [0], [1], [0, 0, 1, 1], [], []>} : vector<64x72xbf16>, vector<72x8xbf16>, vector<64x8xf32> -> vector<64x8xf32>
    %c0_9 = arith.constant 0 : index
    %c0_10 = arith.constant 0 : index
    %16 = vector.load %arg5[%c0_9, %c0_10] : memref<64x8xf32, #tpu.memory_space<vmem>>, vector<64x8xf32>
    tpu.vector_store %arg5[%c0_9, %c0_10], %15 {strides = array<i32>} : memref<64x8xf32, #tpu.memory_space<vmem>>, vector<64x8xf32>,
    %c0_11 = arith.constant 0 : index
    %c0_12 = arith.constant 0 : index
    %17 = vector.load %arg5[%c0_11, %c0_12] : memref<64x8xf32, #tpu.memory_space<vmem>>, vector<64x8xf32>
    %cst_13 = arith.constant dense<0.000000e+00> : vector<8xf32>
    %18 = vector.multi_reduction <add>, %17, %cst_13 [0] : vector<64x8xf32> to vector<8xf32>
    %19 = vector.shape_cast %18 : vector<8xf32> to vector<1x8xf32>
    %20 = vector.shape_cast %19 : vector<1x8xf32> to vector<1x1x8xf32>
    %c0_14 = arith.constant 0 : index
    %c0_15 = arith.constant 0 : index
    %c0_16 = arith.constant 0 : index
    %21 = vector.load %arg6[%c0_14, %c0_15, %c0_16] : memref<1x1x8xf32, #tpu.memory_space<vmem>>, vector<1x1x8xf32>
    tpu.vector_store %arg6[%c0_14, %c0_15, %c0_16], %20 {strides = array<i32>} : memref<1x1x8xf32, #tpu.memory_space<vmem>>, vector<1x1x8xf32>,
    %22 = arith.mulf %17, %17 : vector<64x8xf32>
    %cst_17 = arith.constant dense<0.000000e+00> : vector<8xf32>
    %23 = vector.multi_reduction <add>, %22, %cst_17 [0] : vector<64x8xf32> to vector<8xf32>
    %24 = vector.shape_cast %23 : vector<8xf32> to vector<1x8xf32>
    %25 = vector.shape_cast %24 : vector<1x8xf32> to vector<1x1x8xf32>
    %c0_18 = arith.constant 0 : index
    %c0_19 = arith.constant 0 : index
    %c0_20 = arith.constant 0 : index
    %26 = vector.load %arg7[%c0_18, %c0_19, %c0_20] : memref<1x1x8xf32, #tpu.memory_space<vmem>>, vector<1x1x8xf32>
    tpu.vector_store %arg7[%c0_18, %c0_19, %c0_20], %25 {strides = array<i32>} : memref<1x1x8xf32, #tpu.memory_space<vmem>>, vector<1x1x8xf32>,
    return
  }
  func.func @transform_0(%arg0: i32) -> (i32, i32) {
    %c0_i32 = arith.constant 0 : i32
    %c0_i32_0 = arith.constant 0 : i32
    return %arg0, %c0_i32 : i32, i32
  }
  func.func @transform_1(%arg0: i32) -> (i32, i32) {
    %c0_i32 = arith.constant 0 : i32
    %c0_i32_0 = arith.constant 0 : i32
    %c0_i32_1 = arith.constant 0 : i32
    return %c0_i32, %c0_i32_0 : i32, i32
  }
  func.func @transform_2(%arg0: i32) -> (i32, i32) {
    %c0_i32 = arith.constant 0 : i32
    %c0_i32_0 = arith.constant 0 : i32
    %c0_i32_1 = arith.constant 0 : i32
    return %c0_i32, %c0_i32_0 : i32, i32
  }
  func.func @transform_3(%arg0: i32) -> (i32, i32) {
    %c0_i32 = arith.constant 0 : i32
    %c0_i32_0 = arith.constant 0 : i32
    %c0_i32_1 = arith.constant 0 : i32
    return %c0_i32, %c0_i32_0 : i32, i32
  }
  func.func @transform_4(%arg0: i32) -> (i32, i32) {
    %c0_i32 = arith.constant 0 : i32
    %c0_i32_0 = arith.constant 0 : i32
    return %arg0, %c0_i32 : i32, i32
  }
  func.func @transform_5(%arg0: i32) -> (i32, i32, i32) {
    %c0_i32 = arith.constant 0 : i32
    %c0_i32_0 = arith.constant 0 : i32
    %c0_i32_1 = arith.constant 0 : i32
    return %arg0, %c0_i32, %c0_i32_0 : i32, i32, i32
  }
  func.func @transform_6(%arg0: i32) -> (i32, i32, i32) {
    %c0_i32 = arith.constant 0 : i32
    %c0_i32_0 = arith.constant 0 : i32
    %c0_i32_1 = arith.constant 0 : i32
    return %arg0, %c0_i32, %c0_i32_0 : i32, i32, i32
  }
}

module attributes {stable_mosaic.version = 11 : i64} {
  func.func @_bn_add_act_kernel(%arg0: i32, %arg1: memref<64x8xf32, #tpu.memory_space<vmem>>, %arg2: memref<64x8xbf16, #tpu.memory_space<vmem>>, %arg3: memref<1x8xf32, #tpu.memory_space<vmem>>, %arg4: memref<1x8xf32, #tpu.memory_space<vmem>>, %arg5: memref<1x8xf32, #tpu.memory_space<vmem>>, %arg6: memref<1x8xf32, #tpu.memory_space<vmem>>, %arg7: memref<64x8xf32, #tpu.memory_space<vmem>>) attributes {dimension_semantics = [#tpu.dimension_semantics<parallel>], iteration_bounds = array<i64: 2>, scalar_prefetch = 0 : i64, scratch_operands = 0 : i64, tpu.core_type = #tpu.core_type<tc>, window_params = [{transform_indices = @transform_0, window_bounds = array<i64: 64, 8>}, {transform_indices = @transform_1, window_bounds = array<i64: 64, 8>}, {pipeline_mode = #tpu.pipeline_mode<synchronous>, transform_indices = @transform_2, window_bounds = array<i64: 1, 8>}, {pipeline_mode = #tpu.pipeline_mode<synchronous>, transform_indices = @transform_3, window_bounds = array<i64: 1, 8>}, {pipeline_mode = #tpu.pipeline_mode<synchronous>, transform_indices = @transform_4, window_bounds = array<i64: 1, 8>}, {pipeline_mode = #tpu.pipeline_mode<synchronous>, transform_indices = @transform_5, window_bounds = array<i64: 1, 8>}, {transform_indices = @transform_6, window_bounds = array<i64: 64, 8>}]} {
    %c0 = arith.constant 0 : index
    %c0_0 = arith.constant 0 : index
    %0 = vector.load %arg1[%c0, %c0_0] : memref<64x8xf32, #tpu.memory_space<vmem>>, vector<64x8xf32>
    %c0_1 = arith.constant 0 : index
    %c0_2 = arith.constant 0 : index
    %1 = vector.load %arg3[%c0_1, %c0_2] : memref<1x8xf32, #tpu.memory_space<vmem>>, vector<1x8xf32>
    %2 = vector.broadcast %1 : vector<1x8xf32> to vector<64x8xf32>
    %3 = arith.mulf %0, %2 : vector<64x8xf32>
    %c0_3 = arith.constant 0 : index
    %c0_4 = arith.constant 0 : index
    %4 = vector.load %arg4[%c0_3, %c0_4] : memref<1x8xf32, #tpu.memory_space<vmem>>, vector<1x8xf32>
    %5 = vector.broadcast %4 : vector<1x8xf32> to vector<64x8xf32>
    %6 = arith.addf %3, %5 : vector<64x8xf32>
    %c0_5 = arith.constant 0 : index
    %c0_6 = arith.constant 0 : index
    %7 = vector.load %arg2[%c0_5, %c0_6] : memref<64x8xbf16, #tpu.memory_space<vmem>>, vector<64x8xbf16>
    %8 = arith.extf %7 : vector<64x8xbf16> to vector<64x8xf32>
    %c0_7 = arith.constant 0 : index
    %c0_8 = arith.constant 0 : index
    %9 = vector.load %arg5[%c0_7, %c0_8] : memref<1x8xf32, #tpu.memory_space<vmem>>, vector<1x8xf32>
    %10 = vector.broadcast %9 : vector<1x8xf32> to vector<64x8xf32>
    %11 = arith.mulf %8, %10 : vector<64x8xf32>
    %c0_9 = arith.constant 0 : index
    %c0_10 = arith.constant 0 : index
    %12 = vector.load %arg6[%c0_9, %c0_10] : memref<1x8xf32, #tpu.memory_space<vmem>>, vector<1x8xf32>
    %13 = vector.broadcast %12 : vector<1x8xf32> to vector<64x8xf32>
    %14 = arith.addf %11, %13 : vector<64x8xf32>
    %15 = arith.addf %6, %14 : vector<64x8xf32>
    %cst = arith.constant 0.000000e+00 : f32
    %16 = vector.broadcast %cst : f32 to vector<64x8xf32>
    %17 = arith.cmpf oge, %15, %16 : vector<64x8xf32>
    %cst_11 = arith.constant 0.00999999977 : f32
    %18 = vector.broadcast %cst_11 : f32 to vector<64x8xf32>
    %19 = arith.mulf %18, %15 : vector<64x8xf32>
    %20 = arith.select %17, %15, %19 : vector<64x8xi1>, vector<64x8xf32>
    %c0_12 = arith.constant 0 : index
    %c0_13 = arith.constant 0 : index
    %21 = vector.load %arg7[%c0_12, %c0_13] : memref<64x8xf32, #tpu.memory_space<vmem>>, vector<64x8xf32>
    tpu.vector_store %arg7[%c0_12, %c0_13], %20 {strides = array<i32>} : memref<64x8xf32, #tpu.memory_space<vmem>>, vector<64x8xf32>,
    return
  }
  func.func @transform_0(%arg0: i32) -> (i32, i32) {
    %c0_i32 = arith.constant 0 : i32
    %c0_i32_0 = arith.constant 0 : i32
    return %arg0, %c0_i32 : i32, i32
  }
  func.func @transform_1(%arg0: i32) -> (i32, i32) {
    %c0_i32 = arith.constant 0 : i32
    %c0_i32_0 = arith.constant 0 : i32
    return %arg0, %c0_i32 : i32, i32
  }
  func.func @transform_2(%arg0: i32) -> (i32, i32) {
    %c0_i32 = arith.constant 0 : i32
    %c0_i32_0 = arith.constant 0 : i32
    %c0_i32_1 = arith.constant 0 : i32
    return %c0_i32, %c0_i32_0 : i32, i32
  }
  func.func @transform_3(%arg0: i32) -> (i32, i32) {
    %c0_i32 = arith.constant 0 : i32
    %c0_i32_0 = arith.constant 0 : i32
    %c0_i32_1 = arith.constant 0 : i32
    return %c0_i32, %c0_i32_0 : i32, i32
  }
  func.func @transform_4(%arg0: i32) -> (i32, i32) {
    %c0_i32 = arith.constant 0 : i32
    %c0_i32_0 = arith.constant 0 : i32
    %c0_i32_1 = arith.constant 0 : i32
    return %c0_i32, %c0_i32_0 : i32, i32
  }
  func.func @transform_5(%arg0: i32) -> (i32, i32) {
    %c0_i32 = arith.constant 0 : i32
    %c0_i32_0 = arith.constant 0 : i32
    %c0_i32_1 = arith.constant 0 : i32
    return %c0_i32, %c0_i32_0 : i32, i32
  }
  func.func @transform_6(%arg0: i32) -> (i32, i32) {
    %c0_i32 = arith.constant 0 : i32
    %c0_i32_0 = arith.constant 0 : i32
    return %arg0, %c0_i32 : i32, i32
  }
}

</mosaic_0001>

<bundles_post_ra>
// kernel: tile.18
= control target key start
LH: loop header
LB: loop body
LE: loop exit
PB: predicated region body
PF: predicated region fallthrough
CT: control target
= control target key end

     0   :  { %s28_s0 = inlined_call_operand.vmem [shape: f32[8], index: 0, kind: input, shape index: {}]   ;;  %s29_s1 = inlined_call_operand.vmem [shape: f32[9,8], index: 1, kind: output, shape index: {}]  }
   0x1   :  { %v4_v0 = vld [vmem:[%s28_s0] ss:$0 sm:$0xff] }
   0x2   :  { %5 = vst [vmem:[%s29_s1] sm:$0xff] %v4_v0 }
   0x3   :  { %8 = vst [vmem:[%s29_s1 + $0x8] sm:$0xff] %v4_v0 }

// kernel: tile.24
= control target key start
LH: loop header
LB: loop body
LE: loop exit
PB: predicated region body
PF: predicated region fallthrough
CT: control target
= control target key end

     0   :  { %s75_s10 = smov 64   ;;  %s76_s11 = smov 48   ;;  %vm3_vm0 = vcmask 64512   ;;  %vm9_vm1 = vcmask 589312   ;;  %vm15_vm2 = vcmask 523712   ;;  %vm21_vm3 = vcmask 458112   ;;  %s123_s0 = inlined_call_operand.vmem [shape: f32[9,8], index: 0, kind: input, shape index: {}]   ;;  %s124_s1 = inlined_call_operand.vmem [shape: f32[1,72], index: 1, kind: output, shape index: {}]  }
   0x1   :  { %v59_v0 = vld [vmem:[%s123_s0 + $0x8] sm:$0x1]   ;;  %v61_v1 = vld [vmem:[%s123_s0 + $0x6] sm:$0x1]   ;;  %v63_v2 = vld [vmem:[%s123_s0 + $0x4] sm:$0x1]  }
   0x2   :  { %7 = vrot.lane.b32.xlu0 %v59_v0, %s75_s10  ;;  %19 = vrot.lane.b32.xlu1 %v61_v1, %s76_s11  ;;  %s77_s14 = smov 32   ;;  %v60_v3 = vld [vmem:[%s123_s0 + $0x7] sm:$0x1]   ;;  %v62_v4 = vld [vmem:[%s123_s0 + $0x5] sm:$0x1]   ;;  %s78_s19 = smov 56  }
   0x3   :  { %31 = vrot.lane.b32.xlu2 %v63_v2, %s77_s14  ;;  %s79_s20 = smov 40   ;;  %v64_v5 = vld [vmem:[%s123_s0 + $0x3] sm:$0x1]   ;;  %s80_s23 = smov 24   ;;  %v65_v6 = vld [vmem:[%s123_s0 + $0x2] sm:$0x1]  }
   0x4   :  { %v66_v7 = vld [vmem:[%s123_s0 + $0x1] sm:$0x1]   ;;  %s81_s28 = smov 16   ;;  %s82_s29 = smov 8   ;;  %v2_v8 = vld [vmem:[%s123_s0] sm:$0x1]  }
   0x5   :  { %4 = vst.msk [vmem:[#allocation0] sm:$0x1] %vm3_vm0, %v2_v8   ;;  %vm27_vm4 = vcmask 392512   ;;  %vm33_vm5 = vcmask 326912   ;;  %vm39_vm6 = vcmask 261312   ;;  %vm45_vm7 = vcmask 195712  }
   0x6   :  { %vm51_vm8 = vcmask 130112  }
   0xa   :  { %13 = vrot.lane.b32.xlu0 %v60_v3, %s78_s19  ;;  %25 = vrot.lane.b32.xlu1 %v62_v4, %s79_s20 }
   0xb   :  { %37 = vrot.lane.b32.xlu2 %v64_v5, %s80_s23 }
  0x12   :  { %43 = vrot.lane.b32.xlu0 %v65_v6, %s81_s28  ;;  %49 = vrot.lane.b32.xlu1 %v66_v7, %s82_s29 }
  0x5d   :  { %v32_v9 = vpop.permute.xlu2 %31  }
  0x65   :  { %v38_v10 = vpop.permute.xlu2 %37  }
  0x74   :  { %v8_v11 = vpop.permute.xlu0 %7   ;;  %v20_v12 = vpop.permute.xlu1 %19  }
  0x75   :  { %10 = vst.msk [vmem:[#allocation0] sm:$0x1] %vm9_vm1, %v8_v11  }
  0x7c   :  { %v14_v13 = vpop.permute.xlu0 %13   ;;  %v26_v14 = vpop.permute.xlu1 %25  }
  0x7d   :  { %16 = vst.msk [vmem:[#allocation0] sm:$0x1] %vm15_vm2, %v14_v13  }
  0x7e   :  { %22 = vst.msk [vmem:[#allocation0] sm:$0x1] %vm21_vm3, %v20_v12  }
  0x7f   :  { %28 = vst.msk [vmem:[#allocation0] sm:$0x1] %vm27_vm4, %v26_v14  }
  0x80   :  { %34 = vst.msk [vmem:[#allocation0] sm:$0x1] %vm33_vm5, %v32_v9  }
  0x81   :  { %40 = vst.msk [vmem:[#allocation0] sm:$0x1] %vm39_vm6, %v38_v10  }
  0x84   :  { %v44_v15 = vpop.permute.xlu0 %43   ;;  %v50_v16 = vpop.permute.xlu1 %49  }
  0x85   :  { %46 = vst.msk [vmem:[#allocation0] sm:$0x1] %vm45_vm7, %v44_v15  }
  0x86   :  { %52 = vst.msk [vmem:[#allocation0] sm:$0x1] %vm51_vm8, %v50_v16  }
  0x8d   :  { %v55_v17 = vld [vmem:[#allocation0] sm:$0x1] }
  0x8e   :  { %58 = vst [vmem:[%s124_s1] sm:$0x1] %v55_v17 }

// kernel: basic_block_forward.3
= control target key start
LH: loop header
LB: loop body
LE: loop exit
PB: predicated region body
PF: predicated region fallthrough
CT: control target
= control target key end

     0   :  { %s620_s15 = smov 0   ;;  %s695_s0 = inlined_call_operand.vmem [shape: bf16[128,36], index: 0, kind: input, shape index: {}]   ;;  %s696_s1 = inlined_call_operand.vmem [shape: bf16[36,16], index: 1, kind: input, shape index: {}]   ;;  %s697_s2 = inlined_call_operand.vmem [shape: bf16[128,16], index: 2, kind: output, shape index: {0}]   ;;  %s698_s3 = inlined_call_operand.vmem [shape: f32[2,1,16], index: 3, kind: output, shape index: {1}]   ;;  %s699_s4 = inlined_call_operand.vmem [shape: f32[2,1,16], index: 4, kind: output, shape index: {2}]  }
   0x1 LB: > { %s626_s16 = sadd.s32 4294967295, %s593_s15   ;;  %p510_p0 = scmp.ge.s32.totalorder %s593_s15, 1  ;;  %s593_s15 = sphi %s620_s15, %s15_s15  }
   0x2   : > { %p168_p1 = scmp.lt.s32.totalorder %s593_s15, 3 }
   0x4   : > { %p169_p2 = pnand %p510_p0, %p168_p1 }
   0x5   : > { %s511_s19 = sshll.u32 (!%p169_p2), %s626_s16, 3  ;;  %p212_p4 = scmp.lt.s32.totalorder (!%p169_p2), %s626_s16, 1 }
   0x6   : > { %172 = sbr.rel (%p169_p2) target bundleno = 205 (0xcd), region = 28  ;;  %p201_p3 = scmp.lt.s32.totalorder (!%p169_p2), %s511_s19, 15 }
   0xb   : > { %v231_v0 = vld [vmem:[%s696_s1 + $0x10] sm:$0x3]  ;;  %vm280_vm0 = vcmask 1041408   ;;  %s701_s19 = smov (!%p201_p3, %s511_s19), 15  ;;  %v550_v4 = vld [vmem:[%s696_s1 + $0x8] sm:$0xff]  ;;  %v549_v5 = vld [vmem:[%s696_s1] sm:$0xff] }
   0xc   : > { %v261_v1 = vunpack.c.l.b16 %v231_v0  ;;  %s512_s22 = sshll.u32 %s701_s19, 2  ;;  %vm267_vm1 = vcmask 293888   ;;  %vm321_vm2 = vcmask 125952   ;;  %vm346_vm3 = vcmask 130048   ;;  %s703_s16 = smov (!%p212_p4, %s626_s16), 1 }
   0xd   : > { %s204_s27 = scalar_lea.vmem %s695_s0, %s512_s22  ;;  %s646_s30 = scalar_lea.vmem %s697_s2, %s512_s22  ;;  %vm368_vm4 = vcmask 122880  }
   0xe   : > { %v264_v2 = vpack.c.b16 %v261_v1, %v261_v1  ;;  %v545_v6 = vld [vmem:[%s204_s27] sm:$0xff]  ;;  %v546_v7 = vld [vmem:[%s204_s27 + $0x8] sm:$0xff]  ;;  %v547_v8 = vld [vmem:[%s204_s27 + $0x10] sm:$0xff]  ;;  %s214_s7 = scalar_lea.vmem %s698_s3, %s703_s16  ;;  %s217_s10 = scalar_lea.vmem %s699_s4, %s703_s16 }
   0xf   : > { %v548_v9 = vld [vmem:[%s204_s27 + $0x18] sm:$0xff] }
  0x10   : > { %v282_v3 = vsel %vm280_vm0, %v264_v2, 0 }
  0x11   : > { %289 = vmatpush.bf16.msra.mxu0 %v282_v3  ;;  %570 = vmatpush.bf16.msra.mxu1 %v282_v3 }
  0x12   : > { %571 = vmatpush.bf16.msra.mxu2 %v282_v3  ;;  %572 = vmatpush.bf16.msra.mxu3 %v282_v3 }
  0x15   : > { %290 = vmatpush.bf16.msra.mxu0 %v550_v4  ;;  %573 = vmatpush.bf16.msra.mxu1 %v550_v4 }
  0x16   : > { %574 = vmatpush.bf16.msra.mxu2 %v550_v4  ;;  %575 = vmatpush.bf16.msra.mxu3 %v550_v4 }
  0x19   : > { %291 = vmatpush.bf16.msra.mxu0 %v549_v5  ;;  %576 = vmatpush.bf16.msra.mxu1 %v549_v5 }
  0x1a   : > { %577 = vmatpush.bf16.msra.mxu2 %v549_v5  ;;  %578 = vmatpush.bf16.msra.mxu3 %v549_v5 }
  0x1c   : > { %539 = vmatmul.msk.bf16.vlgmr.msra.gmra.mxu0 %vm267_vm1, %v545_v6  ;;  %540 = vmatmul.msk.bf16.vlgmr.msra.gmra.mxu1 %vm267_vm1, %v546_v7 }
  0x1d   : > { %541 = vmatmul.msk.bf16.vlgmr.msra.gmra.mxu2 %vm267_vm1, %v547_v8  ;;  %542 = vmatmul.msk.bf16.vlgmr.msra.gmra.mxu3 %vm267_vm1, %v548_v9 }
  0x99   : > { %v293_v10 = vpop.f32.mrf.mxu0  ;;  %v298_v11 = vpop.f32.mrf.mxu1 }
  0x9a   : > { %v313_v12 = vpack.c.bf16 %v293_v10, %v293_v10  ;;  %v315_v13 = vpack.c.bf16 %v298_v11, %v298_v11 }
  0x9c   : > { %322 = vst.msk [vmem:[%s646_s30] sm:$0xf] %vm321_vm2, %v313_v12 }
  0x9d   : > { %324 = vst.msk [vmem:[%s646_s30 + $0x8] sm:$0xf] %vm321_vm2, %v315_v13 }
  0xa0   : > { %v303_v14 = vpop.f32.mrf.mxu2  ;;  %v308_v15 = vpop.f32.mrf.mxu3 }
  0xa1   : > { %v317_v16 = vpack.c.bf16 %v303_v14, %v303_v14  ;;  %v319_v17 = vpack.c.bf16 %v308_v15, %v308_v15  ;;  %v295_v18 = vpop.f32.mrf.mxu0  ;;  %v300_v19 = vpop.f32.mrf.mxu1 }
  0xa2   : > { %v314_v20 = vpack.c.bf16 %v295_v18, %v295_v18  ;;  %v316_v21 = vpack.c.bf16 %v300_v19, %v300_v19 }
  0xa3   : > { %326 = vst.msk [vmem:[%s646_s30 + $0x10] sm:$0xf] %vm321_vm2, %v317_v16 }
  0xa4   : > { %328 = vst.msk [vmem:[%s646_s30 + $0x18] sm:$0xf] %vm321_vm2, %v319_v17 }
  0xa5   : > { %323 = vst.msk [vmem:[%s646_s30 + $0x4] sm:$0xf] %vm321_vm2, %v314_v20 }
  0xa6   : > { %325 = vst.msk [vmem:[%s646_s30 + $0xc] sm:$0xf] %vm321_vm2, %v316_v21 }
  0xa8   : > { %v305_v22 = vpop.f32.mrf.mxu2  ;;  %v310_v23 = vpop.f32.mrf.mxu3 }
  0xa9   : > { %v318_v24 = vpack.c.bf16 %v305_v22, %v305_v22  ;;  %v320_v25 = vpack.c.bf16 %v310_v23, %v310_v23 }
  0xab   : > { %327 = vst.msk [vmem:[%s646_s30 + $0x14] sm:$0xf] %vm321_vm2, %v318_v24 }
  0xac   : > { %v552_v26 = vld [vmem:[%s646_s30] sm:$0xff]   ;;  %329 = vst.msk [vmem:[%s646_s30 + $0x1c] sm:$0xf] %vm321_vm2, %v320_v25 }
  0xad   : > { %v553_v27 = vunpack.c.l.bf16 %v552_v26  ;;  %v554_v28 = vunpack.c.h.bf16 %v552_v26  ;;  %v567_v29 = vld [vmem:[%s646_s30 + $0x8] sm:$0xff]  }
  0xae   : > { %v557_v30 = vunpack.c.l.bf16 %v567_v29  ;;  %v558_v31 = vunpack.c.h.bf16 %v567_v29 }
  0xaf   : > { %v347_v32 = vsel %vm346_vm3, %v553_v27, 0.0  ;;  %v348_v33 = vsel %vm346_vm3, %v554_v28, 0.0  ;;  %v370_v34 = vmul.f32 %v553_v27, %v553_v27  ;;  %v371_v35 = vmul.f32 %v554_v28, %v554_v28 }
  0xb0   : > { %v349_v36 = vadd.f32 %v348_v33, %v347_v32  ;;  %v372_v37 = vmul.f32 %v557_v30, %v557_v30  ;;  %v350_v40 = vsel %vm346_vm3, %v557_v30, 0.0  ;;  %v373_v41 = vmul.f32 %v558_v31, %v558_v31 }
  0xb1   : > { %v378_v38 = vsel %vm346_vm3, %v370_v34, 0.0  ;;  %v379_v39 = vsel %vm346_vm3, %v371_v35, 0.0  ;;  %v352_v45 = vsel %vm346_vm3, %v558_v31, 0.0 }
  0xb2   : > { %v380_v42 = vadd.f32 %v379_v39, %v378_v38  ;;  %v351_v43 = vadd.f32 %v350_v40, %v349_v36  ;;  %v568_v44 = vld [vmem:[%s646_s30 + $0x10] sm:$0xff]   ;;  %v381_v46 = vsel %vm346_vm3, %v372_v37, 0.0  ;;  %v383_v52 = vsel %vm346_vm3, %v373_v41, 0.0 }
  0xb3   : > { %v561_v47 = vunpack.c.l.bf16 %v568_v44  ;;  %v562_v48 = vunpack.c.h.bf16 %v568_v44  ;;  %v569_v49 = vld [vmem:[%s646_s30 + $0x18] sm:$0xff]  }
  0xb4   : > { %v353_v50 = vadd.f32 %v352_v45, %v351_v43  ;;  %v382_v51 = vadd.f32 %v381_v46, %v380_v42  ;;  %v565_v53 = vunpack.c.l.bf16 %v569_v49  ;;  %v566_v57 = vunpack.c.h.bf16 %v569_v49 }
  0xb5   : > { %v354_v54 = vsel %vm346_vm3, %v561_v47, 0.0  ;;  %v374_v55 = vmul.f32 %v561_v47, %v561_v47  ;;  %v375_v56 = vmul.f32 %v562_v48, %v562_v48  ;;  %v356_v60 = vsel %vm346_vm3, %v562_v48, 0.0 }
  0xb6   : > { %v384_v58 = vadd.f32 %v383_v52, %v382_v51  ;;  %v355_v59 = vadd.f32 %v354_v54, %v353_v50  ;;  %v376_v62 = vmul.f32 %v565_v53, %v565_v53  ;;  %v358_v2 = vsel %vm346_vm3, %v565_v53, 0.0 }
  0xb7   : > { %v385_v61 = vsel %vm346_vm3, %v374_v55, 0.0  ;;  %v387_v1 = vsel %vm346_vm3, %v375_v56, 0.0  ;;  %v377_v3 = vmul.f32 %v566_v57, %v566_v57  ;;  %v360_v6 = vsel %vm346_vm3, %v566_v57, 0.0 }
  0xb8   : > { %v357_v63 = vadd.f32 %v356_v60, %v355_v59  ;;  %v386_v0 = vadd.f32 %v385_v61, %v384_v58  ;;  %v389_v7 = vsel %vm346_vm3, %v376_v62, 0.0 }
  0xb9   : > { %v391_v10 = vsel %vm346_vm3, %v377_v3, 0.0 }
  0xba   : > { %v388_v4 = vadd.f32 %v387_v1, %v386_v0  ;;  %v359_v5 = vadd.f32 %v358_v2, %v357_v63 }
  0xbc   : > { %v361_v8 = vadd.f32 %v360_v6, %v359_v5  ;;  %v390_v9 = vadd.f32 %v389_v7, %v388_v4 }
  0xbe   : > { %v362_v11 = vrot.slane %v361_v8, 4  ;;  %v392_v12 = vadd.f32 %v391_v10, %v390_v9 }
  0xc0   : > { %v363_v13 = vadd.f32 %v362_v11, %v361_v8  ;;  %v393_v14 = vrot.slane %v392_v12, 4 }
  0xc2   : > { %v364_v15 = vrot.slane %v363_v13, 2  ;;  %v394_v16 = vadd.f32 %v393_v14, %v392_v12 }
  0xc4   : > { %v365_v17 = vadd.f32 %v364_v15, %v363_v13  ;;  %v395_v18 = vrot.slane %v394_v16, 2 }
  0xc6   : > { %v366_v19 = vrot.slane %v365_v17, 1  ;;  %v396_v20 = vadd.f32 %v395_v18, %v394_v16 }
  0xc8   : > { %v367_v21 = vadd.f32 %v366_v19, %v365_v17  ;;  %v397_v22 = vrot.slane %v396_v20, 1 }
  0xca   : > { %369 = vst.msk [vmem:[%s214_s7] sm:$0x1] %vm368_vm4, %v367_v21  ;;  %v398_v23 = vadd.f32 %v397_v22, %v396_v20 }
  0xcc   : > { %399 = vst.msk [vmem:[%s217_s10] sm:$0x1] %vm368_vm4, %v398_v23 }
  0xcd PF: > { %s15_s15 = sadd.s32 1, %s593_s15  }
  0xce   : > { %p12_p5 = scmp.ge.s32.totalorder %s15_s15, 4  }
  0xd0   :  { %14 = sbr.rel (!%p12_p5) target bundleno = 1 (0x1), region = 82 }

// kernel: basic_block_forward.4
= control target key start
LH: loop header
LB: loop body
LE: loop exit
PB: predicated region body
PF: predicated region fallthrough
CT: control target
= control target key end

     0   :  { %s721_s21 = smov 0   ;;  %s816_s0 = inlined_call_operand.vmem [shape: bf16[128,72], index: 0, kind: input, shape index: {}]   ;;  %s817_s1 = inlined_call_operand.vmem [shape: f32[1,72], index: 1, kind: input, shape index: {}]   ;;  %s818_s2 = inlined_call_operand.vmem [shape: f32[1,72], index: 2, kind: input, shape index: {}]   ;;  %s819_s3 = inlined_call_operand.vmem [shape: bf16[72,8], index: 3, kind: input, shape index: {}]   ;;  %s820_s4 = inlined_call_operand.vmem [shape: f32[128,8], index: 4, kind: output, shape index: {0}]   ;;  %s821_s5 = inlined_call_operand.vmem [shape: f32[2,1,8], index: 5, kind: output, shape index: {1}]   ;;  %s822_s6 = inlined_call_operand.vmem [shape: f32[2,1,8], index: 6, kind: output, shape index: {2}]  }
   0x1 LB: > { %s727_s22 = sadd.s32 4294967295, %s684_s21   ;;  %p603_p0 = scmp.ge.s32.totalorder %s684_s21, 1  ;;  %s684_s21 = sphi %s721_s21, %s17_s21  }
   0x2   : > { %p218_p1 = scmp.lt.s32.totalorder %s684_s21, 3 }
   0x4   : > { %p219_p2 = pnand %p603_p0, %p218_p1 }
   0x5   : > { %s604_s25 = sshll.u32 (!%p219_p2), %s727_s22, 3  ;;  %p266_p4 = scmp.lt.s32.totalorder (!%p219_p2), %s727_s22, 1 }
   0x6   : > { %222 = sbr.rel (%p219_p2) target bundleno = 209 (0xd1), region = 36  ;;  %p255_p3 = scmp.lt.s32.totalorder (!%p219_p2), %s604_s25, 15 }
   0xb   : > { %v349_v0 = vld [vmem:[%s819_s3 + $0x20] sm:$0xf]  ;;  %vm390_vm0 = vcmask 1043456   ;;  %s824_s25 = smov (!%p255_p3, %s604_s25), 15  ;;  %v633_v4 = vld [vmem:[%s819_s3 + $0x18] sm:$0xff]  ;;  %v632_v19 = vld [vmem:[%s819_s3 + $0x10] sm:$0xff] }
   0xc   : > { %v367_v1 = vunpack.c.l.b16 %v349_v0  ;;  %s605_s26 = sshll.u32 %s824_s25, 2  ;;  %v676_v5 = vld [vmem:[%s817_s1] ss:$0 sm:$0xff]  ;;  %v631_v30 = vld [vmem:[%s819_s3 + $0x8] sm:$0xff]  ;;  %vm377_vm9 = vcmask 588800   ;;  %s607_s18 = sshll.u32 %s824_s25, 3 }
   0xd   : > { %s258_s7 = scalar_lea.vmem %s816_s0, %s605_s26  ;;  %v677_v11 = vld [vmem:[%s818_s2] ss:$0 sm:$0xff]  ;;  %s763_s23 = scalar_lea.vmem %s820_s4, %s607_s18  ;;  %vm423_vm10 = vcmask 64512   ;;  %vm461_vm11 = vcmask 57344  }
   0xe   : > { %v372_v2 = vpack.c.b16 %v367_v1, %v367_v1  ;;  %v635_v6 = vld [vmem:[%s258_s7] sm:$0xff]   ;;  %v650_v7 = vld [vmem:[%s258_s7 + $0x8] sm:$0xff]   ;;  %v651_v8 = vld [vmem:[%s258_s7 + $0x10] sm:$0xff]   ;;  %s826_s22 = smov (!%p266_p4, %s727_s22), 1 }
   0xf   : > { %v636_v9 = vunpack.c.l.bf16 %v635_v6  ;;  %v637_v10 = vunpack.c.h.bf16 %v635_v6  ;;  %v640_v12 = vunpack.c.l.bf16 %v650_v7  ;;  %v641_v13 = vunpack.c.h.bf16 %v650_v7  ;;  %v652_v14 = vld [vmem:[%s258_s7 + $0x18] sm:$0xff]   ;;  %v630_v43 = vld [vmem:[%s819_s3] sm:$0xff]  ;;  %s268_s26 = scalar_lea.vmem %s821_s5, %s826_s22  ;;  %s271_s29 = scalar_lea.vmem %s822_s6, %s826_s22 }
  0x10   : > { %v392_v3 = vsel %vm390_vm0, %v372_v2, 0  ;;  %v644_v15 = vunpack.c.l.bf16 %v651_v8  ;;  %v645_v16 = vunpack.c.h.bf16 %v651_v8  ;;  %v648_v17 = vunpack.c.l.bf16 %v652_v14 }
  0x11   : > { %397 = vmatpush.bf16.msra.mxu0 %v392_v3  ;;  %653 = vmatpush.bf16.msra.mxu1 %v392_v3  ;;  %v649_v18 = vunpack.c.h.bf16 %v652_v14  ;;  %v293_v20 = vmul.f32 %v676_v5, %v636_v9  ;;  %v294_v21 = vmul.f32 %v676_v5, %v637_v10  ;;  %v295_v22 = vmul.f32 %v676_v5, %v640_v12 }
  0x12   : > { %654 = vmatpush.bf16.msra.mxu2 %v392_v3  ;;  %655 = vmatpush.bf16.msra.mxu3 %v392_v3  ;;  %v296_v23 = vmul.f32 %v676_v5, %v641_v13  ;;  %v297_v24 = vmul.f32 %v676_v5, %v644_v15  ;;  %v298_v25 = vmul.f32 %v676_v5, %v645_v16 }
  0x13   : > { %v305_v26 = vadd.f32 %v677_v11, %v293_v20  ;;  %v306_v27 = vadd.f32 %v677_v11, %v294_v21  ;;  %v307_v28 = vadd.f32 %v677_v11, %v295_v22  ;;  %v299_v29 = vmul.f32 %v676_v5, %v648_v17 }
  0x14   : > { %v308_v31 = vadd.f32 %v677_v11, %v296_v23  ;;  %v309_v32 = vadd.f32 %v677_v11, %v297_v24  ;;  %v310_v33 = vadd.f32 %v677_v11, %v298_v25  ;;  %v300_v34 = vmul.f32 %v676_v5, %v649_v18 }
  0x15   : > { %398 = vmatpush.bf16.msra.mxu0 %v633_v4  ;;  %656 = vmatpush.bf16.msra.mxu1 %v633_v4  ;;  %vm313_vm1 = vcmp.ge.f32.partialorder %v305_v26, 0.0  ;;  %vm314_vm2 = vcmp.ge.f32.partialorder %v306_v27, 0.0  ;;  %v321_v35 = vmul.f32 0.01, %v305_v26  ;;  %v322_v36 = vmul.f32 0.01, %v306_v27 }
  0x16   : > { %657 = vmatpush.bf16.msra.mxu2 %v633_v4  ;;  %658 = vmatpush.bf16.msra.mxu3 %v633_v4  ;;  %vm315_vm3 = vcmp.ge.f32.partialorder %v307_v28, 0.0  ;;  %vm316_vm4 = vcmp.ge.f32.partialorder %v308_v31, 0.0  ;;  %v323_v37 = vmul.f32 0.01, %v307_v28  ;;  %v324_v38 = vmul.f32 0.01, %v308_v31 }
  0x17   : > { %v329_v39 = vsel %vm313_vm1, %v305_v26, %v321_v35  ;;  %vm317_vm5 = vcmp.ge.f32.partialorder %v309_v32, 0.0  ;;  %v330_v40 = vsel %vm314_vm2, %v306_v27, %v322_v36  ;;  %vm318_vm6 = vcmp.ge.f32.partialorder %v310_v33, 0.0 }
  0x18   : > { %v331_v41 = vsel %vm315_vm3, %v307_v28, %v323_v37  ;;  %v325_v42 = vmul.f32 0.01, %v309_v32  ;;  %v332_v44 = vsel %vm316_vm4, %v308_v31, %v324_v38  ;;  %v326_v45 = vmul.f32 0.01, %v310_v33 }
  0x19   : > { %399 = vmatpush.bf16.msra.mxu0 %v632_v19  ;;  %659 = vmatpush.bf16.msra.mxu1 %v632_v19  ;;  %v311_v46 = vadd.f32 %v677_v11, %v299_v29  ;;  %v312_v47 = vadd.f32 %v677_v11, %v300_v34  ;;  %v337_v51 = vpack.c.bf16 %v330_v40, %v329_v39 }
  0x1a   : > { %660 = vmatpush.bf16.msra.mxu2 %v632_v19  ;;  %661 = vmatpush.bf16.msra.mxu3 %v632_v19  ;;  %v333_v48 = vsel %vm317_vm5, %v309_v32, %v325_v42  ;;  %v334_v49 = vsel %vm318_vm6, %v310_v33, %v326_v45  ;;  %v338_v52 = vpack.c.bf16 %v332_v44, %v331_v41 }
  0x1b   : > { %vm319_vm7 = vcmp.ge.f32.partialorder %v311_v46, 0.0  ;;  %vm320_vm8 = vcmp.ge.f32.partialorder %v312_v47, 0.0  ;;  %v327_v50 = vmul.f32 0.01, %v311_v46  ;;  %v328_v53 = vmul.f32 0.01, %v312_v47 }
  0x1c   : > { %v339_v54 = vpack.c.bf16 %v334_v49, %v333_v48 }
  0x1d   : > { %400 = vmatpush.bf16.msra.mxu0 %v631_v30  ;;  %662 = vmatpush.bf16.msra.mxu1 %v631_v30  ;;  %v335_v55 = vsel %vm319_vm7, %v311_v46, %v327_v50  ;;  %v336_v56 = vsel %vm320_vm8, %v312_v47, %v328_v53 }
  0x1e   : > { %663 = vmatpush.bf16.msra.mxu2 %v631_v30  ;;  %664 = vmatpush.bf16.msra.mxu3 %v631_v30  ;;  %v340_v57 = vpack.c.bf16 %v336_v56, %v335_v55 }
  0x21   : > { %401 = vmatpush.bf16.msra.mxu0 %v630_v43  ;;  %665 = vmatpush.bf16.msra.mxu1 %v630_v43 }
  0x22   : > { %666 = vmatpush.bf16.msra.mxu2 %v630_v43  ;;  %667 = vmatpush.bf16.msra.mxu3 %v630_v43 }
  0x24   : > { %624 = vmatmul.msk.bf16.vlgmr.msra.gmra.mxu0 %vm377_vm9, %v337_v51  ;;  %625 = vmatmul.msk.bf16.vlgmr.msra.gmra.mxu1 %vm377_vm9, %v338_v52 }
  0x25   : > { %626 = vmatmul.msk.bf16.vlgmr.msra.gmra.mxu2 %vm377_vm9, %v339_v54  ;;  %627 = vmatmul.msk.bf16.vlgmr.msra.gmra.mxu3 %vm377_vm9, %v340_v57 }
  0xa1   : > { %v403_v58 = vpop.f32.mrf.mxu0  ;;  %v408_v59 = vpop.f32.mrf.mxu1 }
  0xa2   : > { %424 = vst.msk [vmem:[%s763_s23] sm:$0xff] %vm423_vm10, %v403_v58 }
  0xa3   : > { %426 = vst.msk [vmem:[%s763_s23 + $0x10] sm:$0xff] %vm423_vm10, %v408_v59 }
  0xa8   : > { %v413_v60 = vpop.f32.mrf.mxu2  ;;  %v418_v61 = vpop.f32.mrf.mxu3 }
  0xa9   : > { %428 = vst.msk [vmem:[%s763_s23 + $0x20] sm:$0xff] %vm423_vm10, %v413_v60  ;;  %v405_v62 = vpop.f32.mrf.mxu0  ;;  %v410_v63 = vpop.f32.mrf.mxu1  ;;  %v432_v0 = vld [vmem:[%s763_s23] sm:$0xff] }
  0xaa   : > { %430 = vst.msk [vmem:[%s763_s23 + $0x30] sm:$0xff] %vm423_vm10, %v418_v61  ;;  %v434_v1 = vld [vmem:[%s763_s23 + $0x10] sm:$0xff]  ;;  %v463_v4 = vmul.f32 %v432_v0, %v432_v0  ;;  %v440_v6 = vsel %vm423_vm10, %v432_v0, 0.0 }
  0xab   : > { %425 = vst.msk [vmem:[%s763_s23 + $0x8] sm:$0xff] %vm423_vm10, %v405_v62  ;;  %v465_v7 = vmul.f32 %v434_v1, %v434_v1  ;;  %v443_v14 = vsel %vm423_vm10, %v434_v1, 0.0 }
  0xac   : > { %427 = vst.msk [vmem:[%s763_s23 + $0x18] sm:$0xff] %vm423_vm10, %v410_v63  ;;  %v471_v13 = vsel %vm423_vm10, %v463_v4, 0.0 }
  0xad   : > { %v474_v19 = vsel %vm423_vm10, %v465_v7, 0.0 }
  0xb0   : > { %v415_v2 = vpop.f32.mrf.mxu2  ;;  %v420_v3 = vpop.f32.mrf.mxu3  ;;  %v436_v11 = vld [vmem:[%s763_s23 + $0x20] sm:$0xff] }
  0xb1   : > { %429 = vst.msk [vmem:[%s763_s23 + $0x28] sm:$0xff] %vm423_vm10, %v415_v2  ;;  %v467_v20 = vmul.f32 %v436_v11, %v436_v11  ;;  %v438_v22 = vld [vmem:[%s763_s23 + $0x30] sm:$0xff]  ;;  %v447_v26 = vsel %vm423_vm10, %v436_v11, 0.0 }
  0xb2   : > { %v433_v5 = vld [vmem:[%s763_s23 + $0x8] sm:$0xff]  ;;  %431 = vst.msk [vmem:[%s763_s23 + $0x38] sm:$0xff] %vm423_vm10, %v420_v3  ;;  %v469_v33 = vmul.f32 %v438_v22, %v438_v22  ;;  %v451_v37 = vsel %vm423_vm10, %v438_v22, 0.0 }
  0xb3   : > { %v441_v8 = vsel %vm423_vm10, %v433_v5, 0.0  ;;  %v464_v9 = vmul.f32 %v433_v5, %v433_v5  ;;  %v435_v10 = vld [vmem:[%s763_s23 + $0x18] sm:$0xff]  ;;  %v478_v32 = vsel %vm423_vm10, %v467_v20, 0.0 }
  0xb4   : > { %v442_v12 = vadd.f32 %v441_v8, %v440_v6  ;;  %v466_v16 = vmul.f32 %v435_v10, %v435_v10  ;;  %v445_v21 = vsel %vm423_vm10, %v435_v10, 0.0  ;;  %v482_v42 = vsel %vm423_vm10, %v469_v33, 0.0 }
  0xb5   : > { %v472_v15 = vsel %vm423_vm10, %v464_v9, 0.0 }
  0xb6   : > { %v473_v17 = vadd.f32 %v472_v15, %v471_v13  ;;  %v444_v18 = vadd.f32 %v443_v14, %v442_v12  ;;  %v476_v27 = vsel %vm423_vm10, %v466_v16, 0.0 }
  0xb8   : > { %v446_v23 = vadd.f32 %v445_v21, %v444_v18  ;;  %v475_v24 = vadd.f32 %v474_v19, %v473_v17  ;;  %v437_v25 = vld [vmem:[%s763_s23 + $0x28] sm:$0xff] }
  0xb9   : > { %v468_v28 = vmul.f32 %v437_v25, %v437_v25  ;;  %v439_v31 = vld [vmem:[%s763_s23 + $0x38] sm:$0xff]  ;;  %v449_v34 = vsel %vm423_vm10, %v437_v25, 0.0 }
  0xba   : > { %v477_v29 = vadd.f32 %v476_v27, %v475_v24  ;;  %v448_v30 = vadd.f32 %v447_v26, %v446_v23  ;;  %v470_v39 = vmul.f32 %v439_v31, %v439_v31  ;;  %v453_v43 = vsel %vm423_vm10, %v439_v31, 0.0 }
  0xbb   : > { %v480_v38 = vsel %vm423_vm10, %v468_v28, 0.0 }
  0xbc   : > { %v450_v35 = vadd.f32 %v449_v34, %v448_v30  ;;  %v479_v36 = vadd.f32 %v478_v32, %v477_v29  ;;  %v484_v46 = vsel %vm423_vm10, %v470_v39, 0.0 }
  0xbe   : > { %v481_v40 = vadd.f32 %v480_v38, %v479_v36  ;;  %v452_v41 = vadd.f32 %v451_v37, %v450_v35 }
  0xc0   : > { %v454_v44 = vadd.f32 %v453_v43, %v452_v41  ;;  %v483_v45 = vadd.f32 %v482_v42, %v481_v40 }
  0xc2   : > { %v455_v47 = vrot.slane %v454_v44, 4  ;;  %v485_v48 = vadd.f32 %v484_v46, %v483_v45 }
  0xc4   : > { %v456_v49 = vadd.f32 %v455_v47, %v454_v44  ;;  %v486_v50 = vrot.slane %v485_v48, 4 }
  0xc6   : > { %v457_v51 = vrot.slane %v456_v49, 2  ;;  %v487_v52 = vadd.f32 %v486_v50, %v485_v48 }
  0xc8   : > { %v458_v53 = vadd.f32 %v457_v51, %v456_v49  ;;  %v488_v54 = vrot.slane %v487_v52, 2 }
  0xca   : > { %v459_v55 = vrot.slane %v458_v53, 1  ;;  %v489_v56 = vadd.f32 %v488_v54, %v487_v52 }
  0xcc   : > { %v460_v57 = vadd.f32 %v459_v55, %v458_v53  ;;  %v490_v58 = vrot.slane %v489_v56, 1 }
  0xce   : > { %462 = vst.msk [vmem:[%s268_s26] sm:$0x1] %vm461_vm11, %v460_v57  ;;  %v491_v59 = vadd.f32 %v490_v58, %v489_v56 }
  0xd0   : > { %492 = vst.msk [vmem:[%s271_s29] sm:$0x1] %vm461_vm11, %v491_v59 }
  0xd1 PF: > { %s17_s21 = sadd.s32 1, %s684_s21  }
  0xd2   : > { %p14_p5 = scmp.ge.s32.totalorder %s17_s21, 4  }
  0xd4   :  { %16 = sbr.rel (!%p14_p5) target bundleno = 1 (0x1), region = 90 }

// kernel: basic_block_forward.5
= control target key start
LH: loop header
LB: loop body
LE: loop exit
PB: predicated region body
PF: predicated region fallthrough
CT: control target
= control target key end

     0   :  { %s545_s21 = smov 0   ;;  %s659_s0 = inlined_call_operand.vmem [shape: f32[128,8], index: 0, kind: input, shape index: {}]   ;;  %s660_s1 = inlined_call_operand.vmem [shape: bf16[128,8], index: 1, kind: input, shape index: {}]   ;;  %s661_s2 = inlined_call_operand.vmem [shape: f32[1,8], index: 2, kind: input, shape index: {}]   ;;  %s662_s3 = inlined_call_operand.vmem [shape: f32[1,8], index: 3, kind: input, shape index: {}]   ;;  %s663_s4 = inlined_call_operand.vmem [shape: f32[1,8], index: 4, kind: input, shape index: {}]   ;;  %s664_s5 = inlined_call_operand.vmem [shape: f32[1,8], index: 5, kind: input, shape index: {}]   ;;  %s665_s6 = inlined_call_operand.vmem [shape: f32[128,8], index: 6, kind: output, shape index: {}]  }
   0x1 LB: > { %s458_s22 = sadd.s32 4294967295, %s508_s21   ;;  %p462_p0 = scmp.ge.s32.totalorder %s508_s21, 1  ;;  %s508_s21 = sphi %s545_s21, %s16_s21  }
   0x2   : > { %p224_p1 = scmp.lt.s32.totalorder %s508_s21, 3 }
   0x4   : > { %p225_p2 = pnand %p462_p0, %p224_p1 }
   0x5   : > { %s463_s23 = sshll.u32 (!%p225_p2), %s458_s22, 3 }
   0x6   : > { %228 = sbr.rel (%p225_p2) target bundleno = 40 (0x28), region = 44  ;;  %p260_p3 = scmp.lt.s32.totalorder (!%p225_p2), %s463_s23, 15 }
   0xb   : > { %s667_s23 = smov (!%p260_p3, %s463_s23), 15  ;;  %v558_v0 = vld [vmem:[%s661_s2] ss:$0 sm:$0xff]  ;;  %vm381_vm0 = vcmask 64512  }
   0xc   : > { %s464_s26 = sshll.u32 %s667_s23, 3  ;;  %s466_s27 = sshll.u32 %s667_s23, 2  ;;  %v577_v1 = vld [vmem:[%s662_s3] ss:$0 sm:$0xff] }
   0xd   : > { %s567_s30 = scalar_lea.vmem %s659_s0, %s464_s26  ;;  %s572_s9 = scalar_lea.vmem %s660_s1, %s466_s27  ;;  %v582_v2 = vld [vmem:[%s663_s4] ss:$0 sm:$0xff] }
   0xe   : > { %v587_v3 = vld [vmem:[%s664_s5] ss:$0 sm:$0xff]  ;;  %v278_v6 = vld [vmem:[%s567_s30 + $0x8] sm:$0xff]  ;;  %v279_v11 = vld [vmem:[%s567_s30 + $0x10] sm:$0xff]  ;;  %s628_s18 = scalar_lea.vmem %s665_s6, %s464_s26 }
   0xf   : > { %v277_v4 = vld [vmem:[%s567_s30] sm:$0xff]  ;;  %v290_v9 = vmul.f32 %v558_v0, %v278_v6  ;;  %v487_v12 = vld [vmem:[%s572_s9 + $0x8] sm:$0xff]   ;;  %v280_v13 = vld [vmem:[%s567_s30 + $0x18] sm:$0xff]  ;;  %v291_v14 = vmul.f32 %v558_v0, %v279_v11 }
  0x10   : > { %v472_v5 = vld [vmem:[%s572_s9] sm:$0xff]   ;;  %v289_v7 = vmul.f32 %v558_v0, %v277_v4  ;;  %v477_v15 = vunpack.c.l.bf16 %v487_v12  ;;  %v292_v16 = vmul.f32 %v558_v0, %v280_v13  ;;  %v478_v17 = vunpack.c.h.bf16 %v487_v12  ;;  %v488_v19 = vld [vmem:[%s572_s9 + $0x10] sm:$0xff]   ;;  %v282_v24 = vld [vmem:[%s567_s30 + $0x28] sm:$0xff] }
  0x11   : > { %v473_v8 = vunpack.c.l.bf16 %v472_v5  ;;  %v474_v10 = vunpack.c.h.bf16 %v472_v5  ;;  %v281_v18 = vld [vmem:[%s567_s30 + $0x20] sm:$0xff]  ;;  %v302_v22 = vadd.f32 %v577_v1, %v290_v9  ;;  %v303_v25 = vadd.f32 %v577_v1, %v291_v14  ;;  %v283_v45 = vld [vmem:[%s567_s30 + $0x30] sm:$0xff]  ;;  %v489_v46 = vld [vmem:[%s572_s9 + $0x18] sm:$0xff]  }
  0x12   : > { %v301_v20 = vadd.f32 %v577_v1, %v289_v7  ;;  %v331_v26 = vmul.f32 %v582_v2, %v477_v15  ;;  %v304_v27 = vadd.f32 %v577_v1, %v292_v16  ;;  %v332_v28 = vmul.f32 %v582_v2, %v478_v17  ;;  %v284_v47 = vld [vmem:[%s567_s30 + $0x38] sm:$0xff] }
  0x13   : > { %v329_v21 = vmul.f32 %v582_v2, %v473_v8  ;;  %v330_v23 = vmul.f32 %v582_v2, %v474_v10  ;;  %v293_v31 = vmul.f32 %v558_v0, %v281_v18  ;;  %v481_v32 = vunpack.c.l.bf16 %v488_v19 }
  0x14   : > { %v343_v33 = vadd.f32 %v587_v3, %v331_v26  ;;  %v344_v34 = vadd.f32 %v587_v3, %v332_v28  ;;  %v294_v35 = vmul.f32 %v558_v0, %v282_v24  ;;  %v482_v36 = vunpack.c.h.bf16 %v488_v19 }
  0x15   : > { %v341_v29 = vadd.f32 %v587_v3, %v329_v21  ;;  %v342_v30 = vadd.f32 %v587_v3, %v330_v23  ;;  %v305_v39 = vadd.f32 %v577_v1, %v293_v31  ;;  %v333_v40 = vmul.f32 %v582_v2, %v481_v32 }
  0x16   : > { %v351_v41 = vadd.f32 %v343_v33, %v303_v25  ;;  %v352_v42 = vadd.f32 %v344_v34, %v304_v27  ;;  %v306_v43 = vadd.f32 %v577_v1, %v294_v35  ;;  %v334_v44 = vmul.f32 %v582_v2, %v482_v36 }
  0x17   : > { %v349_v37 = vadd.f32 %v341_v29, %v301_v20  ;;  %v350_v38 = vadd.f32 %v342_v30, %v302_v22  ;;  %v345_v54 = vadd.f32 %v587_v3, %v333_v40  ;;  %v295_v58 = vmul.f32 %v558_v0, %v283_v45 }
  0x18   : > { %vm359_vm3 = vcmp.ge.f32.partialorder %v351_v41, 0.0  ;;  %v367_v50 = vmul.f32 0.01, %v351_v41  ;;  %vm360_vm4 = vcmp.ge.f32.partialorder %v352_v42, 0.0  ;;  %v368_v51 = vmul.f32 0.01, %v352_v42 }
  0x19   : > { %vm357_vm1 = vcmp.ge.f32.partialorder %v349_v37, 0.0  ;;  %v365_v48 = vmul.f32 0.01, %v349_v37  ;;  %vm358_vm2 = vcmp.ge.f32.partialorder %v350_v38, 0.0  ;;  %v366_v49 = vmul.f32 0.01, %v350_v38 }
  0x1a   : > { %v346_v55 = vadd.f32 %v587_v3, %v334_v44  ;;  %v375_v56 = vsel %vm359_vm3, %v351_v41, %v367_v50  ;;  %v376_v57 = vsel %vm360_vm4, %v352_v42, %v368_v51  ;;  %v485_v59 = vunpack.c.l.bf16 %v489_v46 }
  0x1b   : > { %v373_v52 = vsel %vm357_vm1, %v349_v37, %v365_v48  ;;  %v374_v53 = vsel %vm358_vm2, %v350_v38, %v366_v49  ;;  %v353_v60 = vadd.f32 %v345_v54, %v305_v39  ;;  %v296_v62 = vmul.f32 %v558_v0, %v284_v47  ;;  %384 = vst.msk [vmem:[%s628_s18 + $0x10] sm:$0xff] %vm381_vm0, %v375_v56 }
  0x1c   : > { %382 = vst.msk [vmem:[%s628_s18] sm:$0xff] %vm381_vm0, %v373_v52  ;;  %v354_v61 = vadd.f32 %v346_v55, %v306_v43  ;;  %v486_v63 = vunpack.c.h.bf16 %v489_v46  ;;  %v307_v4 = vadd.f32 %v577_v1, %v295_v58  ;;  %v335_v5 = vmul.f32 %v582_v2, %v485_v59 }
  0x1d   : > { %383 = vst.msk [vmem:[%s628_s18 + $0x8] sm:$0xff] %vm381_vm0, %v374_v53  ;;  %vm361_vm5 = vcmp.ge.f32.partialorder %v353_v60, 0.0  ;;  %v369_v6 = vmul.f32 0.01, %v353_v60  ;;  %v308_v9 = vadd.f32 %v577_v1, %v296_v62 }
  0x1e   : > { %385 = vst.msk [vmem:[%s628_s18 + $0x18] sm:$0xff] %vm381_vm0, %v376_v57  ;;  %vm362_vm6 = vcmp.ge.f32.partialorder %v354_v61, 0.0  ;;  %v370_v7 = vmul.f32 0.01, %v354_v61  ;;  %v347_v8 = vadd.f32 %v587_v3, %v335_v5  ;;  %v336_v0 = vmul.f32 %v582_v2, %v486_v63 }
  0x1f   : > { %v377_v10 = vsel %vm361_vm5, %v353_v60, %v369_v6 }
  0x20   : > { %386 = vst.msk [vmem:[%s628_s18 + $0x20] sm:$0xff] %vm381_vm0, %v377_v10  ;;  %v378_v11 = vsel %vm362_vm6, %v354_v61, %v370_v7  ;;  %v355_v12 = vadd.f32 %v347_v8, %v307_v4  ;;  %v348_v13 = vadd.f32 %v587_v3, %v336_v0 }
  0x21   : > { %387 = vst.msk [vmem:[%s628_s18 + $0x28] sm:$0xff] %vm381_vm0, %v378_v11 }
  0x22   : > { %vm363_vm7 = vcmp.ge.f32.partialorder %v355_v12, 0.0  ;;  %v371_v14 = vmul.f32 0.01, %v355_v12  ;;  %v356_v15 = vadd.f32 %v348_v13, %v308_v9 }
  0x24   : > { %v379_v16 = vsel %vm363_vm7, %v355_v12, %v371_v14  ;;  %vm364_vm8 = vcmp.ge.f32.partialorder %v356_v15, 0.0  ;;  %v372_v17 = vmul.f32 0.01, %v356_v15 }
  0x25   : > { %388 = vst.msk [vmem:[%s628_s18 + $0x30] sm:$0xff] %vm381_vm0, %v379_v16 }
  0x26   : > { %v380_v1 = vsel %vm364_vm8, %v356_v15, %v372_v17 }
  0x27   : > { %389 = vst.msk [vmem:[%s628_s18 + $0x38] sm:$0xff] %vm381_vm0, %v380_v1 }
  0x28 PF: > { %s16_s21 = sadd.s32 1, %s508_s21  }
  0x29   : > { %p13_p4 = scmp.ge.s32.totalorder %s16_s21, 4  }
  0x2b   :  { %15 = sbr.rel (!%p13_p4) target bundleno = 1 (0x1), region = 77 }

</bundles_post_ra>
